<compile_context>
chip_gen: v7x
topology: tpu7x:2x2x1
jax: 0.10.0
libtpu: 0.0.40
codegen_flags: <defaults>
</compile_context>

<pallas_src>
import functools
import inspect

import jax
import jax.numpy as jnp
from jax.experimental import pallas as pl
from jax.experimental.pallas import tpu as pltpu


def _supports_single_buffering() -> bool:
    if not hasattr(pl, "Buffered"):
        return False
    try:
        return "pipeline_mode" in inspect.signature(pl.BlockSpec).parameters
    except (TypeError, ValueError):
        return False


_HAS_BUFFERED = _supports_single_buffering()


def _vmem_capacity_bytes() -> int:
    """Physical per-core VMEM; conservative fallback if the query is unavailable."""
    try:
        return int(pltpu.get_tpu_info().vmem_capacity_bytes)
    except Exception:
        return 64 * 1024 * 1024  # v7x per-TC size (safe lower bound everywhere)


def _const_block_spec(block_shape, index_map):
    """BlockSpec for constant (never-revisited) operands: single-buffered if possible."""
    if _HAS_BUFFERED:
        return pl.BlockSpec(block_shape, index_map, pipeline_mode=pl.Buffered(1))
    return pl.BlockSpec(block_shape, index_map)


def _conv3d_s2_kernel(w_ref, b_ref, p0_ref, p1_ref, p2_ref, p3_ref, p4_ref, o_ref):
    """Two output depths of the stride-2 3x3x3 conv for one HW row tile.

    p{k}_ref : (1, 1, TM, 9*C) bf16  H/W-tap-gathered rows, padded depth plane 4*db+k
    w_ref    : (3, 9*C, Cout)  bf16  (kd, kh*kw*Cin, Cout)
    b_ref    : (1, Cout)       f32
    o_ref    : (1, 2, TM, Cout) f32  output depths 2*db and 2*db+1
    """
    w0 = w_ref[0, :, :]
    w1 = w_ref[1, :, :]
    w2 = w_ref[2, :, :]
    b = b_ref[...]

    # output depth 2*db  <- planes 4*db + {0,1,2}
    acc = jnp.dot(p0_ref[0, 0, :, :], w0, preferred_element_type=jnp.float32)
    acc = acc + jnp.dot(p1_ref[0, 0, :, :], w1, preferred_element_type=jnp.float32)
    acc = acc + jnp.dot(p2_ref[0, 0, :, :], w2, preferred_element_type=jnp.float32)
    o_ref[0, 0, :, :] = (acc + b).astype(o_ref.dtype)

    # output depth 2*db+1 <- planes 4*db + {2,3,4}  (plane 2 shared with the above)
    acc = jnp.dot(p2_ref[0, 0, :, :], w0, preferred_element_type=jnp.float32)
    acc = acc + jnp.dot(p3_ref[0, 0, :, :], w1, preferred_element_type=jnp.float32)
    acc = acc + jnp.dot(p4_ref[0, 0, :, :], w2, preferred_element_type=jnp.float32)
    o_ref[0, 1, :, :] = (acc + b).astype(o_ref.dtype)


@functools.partial(jax.jit, static_argnames=("compute_dtype",))
def downsample_pallas(x, weight, bias, *, compute_dtype=jnp.bfloat16):
    """Conv3d(C, Cout, (3,3,3), stride (2,2,2), padding (1,1,1)).

    x:      (N, C, D, H, W) float32 (PyTorch NCDHW)
    weight: (Cout, C, 3, 3, 3)
    bias:   (Cout,)
    returns (N, Cout, Dout, Hout, Wout) float32
    """
    N, C, D, H, W = x.shape
    Cout = weight.shape[0]
    Dout = (D - 1) // 2 + 1
    Hout = (H - 1) // 2 + 1
    Wout = (W - 1) // 2 + 1

    # Two output depths per grid step; pad so every depth block is full-sized and
    # every padded-plane index 4*db + kd (kd in 0..4) is in bounds.
    n_dblk = -(-Dout // 2)
    Dout_pad = 2 * n_dblk
    pad_back_d = max(1, 2 * Dout_pad - D)
    Dp = 1 + D + pad_back_d

    # ---- XLA glue (indexing only): pad, channels-last, gather 9 in-plane taps ----
    xp = jnp.pad(x, ((0, 0), (0, 0), (1, pad_back_d), (1, 1), (1, 1)))
    xp = jnp.transpose(xp, (0, 2, 3, 4, 1)).astype(compute_dtype)   # (N,Dp,Hp,Wp,C)

    taps = []
    for kh in range(3):
        for kw in range(3):
            taps.append(xp[:, :,
                           kh:kh + 2 * Hout - 1:2,
                           kw:kw + 2 * Wout - 1:2,
                           :])
    # column index = (kh*3 + kw)*C + c
    g = jnp.concatenate(taps, axis=-1)                   # (N, Dp, Hout, Wout, 9C)
    HW = Hout * Wout
    K9 = 9 * C
    g = g.reshape(N, Dp, HW, K9)                         # (N, Dp, HW, 9C)

    # weight -> (kd, kh, kw, Cin, Cout) -> (3, 9C, Cout), matching g's columns
    w = jnp.transpose(weight, (2, 3, 4, 1, 0)).reshape(3, K9, Cout).astype(compute_dtype)
    b = bias.reshape(1, Cout).astype(jnp.float32)

    # ---- generation-aware VMEM budgeting & row-tile size ----
    vmem_phys = _vmem_capacity_bytes()
    budget = (vmem_phys * 3) // 4          # ~48 MiB on v7x, ~96 MiB on v5e/v6e
    item = jnp.dtype(compute_dtype).itemsize
    w_bufs = 1 if _HAS_BUFFERED else 2
    fixed = w_bufs * 3 * K9 * Cout * item + 64 * 1024          # weights + bias/slack
    per_row = (5 * 2 * K9 * item           # 5 input plane streams, double-buffered
               + 2 * 2 * Cout * 4)         # f32 output (2 depths), double-buffered
    tm_cap = max(8, (budget - fixed) // per_row)
    tm_hi = 1024 if vmem_phys >= (100 << 20) else 512
    TM = int(min(HW, tm_hi, tm_cap))
    if TM < HW:
        TM = max(8, (TM // 8) * 8)
    grid = (N, n_dblk, pl.cdiv(HW, TM))

    def plane_spec(kd):
        # depth tap kd of output-depth pair db lives at padded plane 4*db + kd
        return pl.BlockSpec((1, 1, TM, K9),
                            lambda n, db, j, kd=kd: (n, 4 * db + kd, j, 0))

    w_spec = _const_block_spec((3, K9, Cout), lambda n, db, j: (0, 0, 0))
    b_spec = _const_block_spec((1, Cout), lambda n, db, j: (0, 0))
    out_spec = pl.BlockSpec((1, 2, TM, Cout), lambda n, db, j: (n, db, j, 0))

    out = pl.pallas_call(
        _conv3d_s2_kernel,
        out_shape=jax.ShapeDtypeStruct((N, Dout_pad, HW, Cout), x.dtype),
        grid=grid,
        in_specs=[w_spec, b_spec] + [plane_spec(kd) for kd in range(5)],
        out_specs=out_spec,
        compiler_params=pltpu.CompilerParams(
            dimension_semantics=("parallel", "parallel", "parallel"),
            vmem_limit_bytes=int(budget)),
    )(w, b, g, g, g, g, g)

    out = out.reshape(N, Dout_pad, Hout, Wout, Cout)[:, :Dout]
    return jnp.transpose(out, (0, 4, 1, 2, 3))   # -> NCDHW (output is 8x smaller)


def _reference(x, weight, bias):
    return jax.lax.conv_general_dilated(
        x, weight, window_strides=(2, 2, 2),
        padding=((1, 1), (1, 1), (1, 1)),
        dimension_numbers=("NCDHW", "OIDHW", "NCDHW"),
    ) + bias.reshape(1, -1, 1, 1, 1)


if __name__ == "__main__":
    key = jax.random.PRNGKey(0)

    # Second shape has odd Dout to exercise the padded-depth / masked-tail path.
    shapes = [(2, 4, 8, 8, 8), (2, 4, 6, 8, 8)]
    for idx, (N, C, D, H, W) in enumerate(shapes):
        kx, kw, kb, key = jax.random.split(key, 4)
        x = jax.random.normal(kx, (N, C, D, H, W), dtype=jnp.float32)
        # Deterministic synthetic parameters (shapes match nn.Conv3d(C, C, 3, 2, 1))
        fan_in = C * 3 * 3 * 3
        bound = 1.0 / (fan_in ** 0.5)
        weight = jax.random.uniform(kw, (C, C, 3, 3, 3), jnp.float32, -bound, bound)
        bias = jax.random.uniform(kb, (C,), jnp.float32, -bound, bound)

        out = downsample_pallas(x, weight, bias)
        out = jax.block_until_ready(out)

        ref = _reference(x, weight, bias)
        assert out.shape == ref.shape, (out.shape, ref.shape)
        max_err = float(jnp.max(jnp.abs(out - ref)))
        # kernel matmul path is bf16 (f32 accumulation) -> loose tolerance
        assert jnp.allclose(out, ref, atol=5e-2, rtol=5e-2), (idx, max_err)

    print("KERNEL_OK")
</pallas_src>

<mosaic_0001>
module attributes {stable_mosaic.version = 11 : i64} {
  func.func @_conv3d_s2_kernel(%arg0: i32, %arg1: i32, %arg2: i32, %arg3: memref<3x36x4xbf16, #tpu.memory_space<vmem>>, %arg4: memref<1x4xf32, #tpu.memory_space<vmem>>, %arg5: memref<1x1x16x36xbf16, #tpu.memory_space<vmem>>, %arg6: memref<1x1x16x36xbf16, #tpu.memory_space<vmem>>, %arg7: memref<1x1x16x36xbf16, #tpu.memory_space<vmem>>, %arg8: memref<1x1x16x36xbf16, #tpu.memory_space<vmem>>, %arg9: memref<1x1x16x36xbf16, #tpu.memory_space<vmem>>, %arg10: memref<1x2x16x4xf32, #tpu.memory_space<vmem>>) attributes {dimension_semantics = [#tpu.dimension_semantics<parallel>, #tpu.dimension_semantics<parallel>, #tpu.dimension_semantics<parallel>], iteration_bounds = array<i64: 2, 2, 1>, scalar_prefetch = 0 : i64, scratch_operands = 0 : i64, tpu.core_type = #tpu.core_type<tc>, window_params = [{pipeline_mode = #tpu.pipeline_mode<synchronous>, transform_indices = @transform_0, window_bounds = array<i64: 3, 36, 4>}, {pipeline_mode = #tpu.pipeline_mode<synchronous>, transform_indices = @transform_1, window_bounds = array<i64: 1, 4>}, {transform_indices = @transform_2, window_bounds = array<i64: 1, 1, 16, 36>}, {transform_indices = @transform_3, window_bounds = array<i64: 1, 1, 16, 36>}, {transform_indices = @transform_4, window_bounds = array<i64: 1, 1, 16, 36>}, {transform_indices = @transform_5, window_bounds = array<i64: 1, 1, 16, 36>}, {transform_indices = @transform_6, window_bounds = array<i64: 1, 1, 16, 36>}, {transform_indices = @transform_7, window_bounds = array<i64: 1, 2, 16, 4>}]} {
    %c0 = arith.constant 0 : index
    %c0_0 = arith.constant 0 : index
    %c0_1 = arith.constant 0 : index
    %0 = vector.load %arg3[%c0, %c0_0, %c0_1] : memref<3x36x4xbf16, #tpu.memory_space<vmem>>, vector<1x36x4xbf16>
    %1 = vector.shape_cast %0 : vector<1x36x4xbf16> to vector<36x4xbf16>
    %c1 = arith.constant 1 : index
    %c0_2 = arith.constant 0 : index
    %c0_3 = arith.constant 0 : index
    %2 = vector.load %arg3[%c1, %c0_2, %c0_3] : memref<3x36x4xbf16, #tpu.memory_space<vmem>>, vector<1x36x4xbf16>
    %3 = vector.shape_cast %2 : vector<1x36x4xbf16> to vector<36x4xbf16>
    %c2 = arith.constant 2 : index
    %c0_4 = arith.constant 0 : index
    %c0_5 = arith.constant 0 : index
    %4 = vector.load %arg3[%c2, %c0_4, %c0_5] : memref<3x36x4xbf16, #tpu.memory_space<vmem>>, vector<1x36x4xbf16>
    %5 = vector.shape_cast %4 : vector<1x36x4xbf16> to vector<36x4xbf16>
    %c0_6 = arith.constant 0 : index
    %c0_7 = arith.constant 0 : index
    %6 = vector.load %arg4[%c0_6, %c0_7] : memref<1x4xf32, #tpu.memory_space<vmem>>, vector<1x4xf32>
    %c0_8 = arith.constant 0 : index
    %c0_9 = arith.constant 0 : index
    %c0_10 = arith.constant 0 : index
    %c0_11 = arith.constant 0 : index
    %7 = vector.load %arg5[%c0_8, %c0_9, %c0_10, %c0_11] : memref<1x1x16x36xbf16, #tpu.memory_space<vmem>>, vector<1x1x16x36xbf16>
    %8 = vector.shape_cast %7 : vector<1x1x16x36xbf16> to vector<16x36xbf16>
    %cst = arith.constant dense<0.000000e+00> : vector<16x4xf32>
    %9 = tpu.matmul %8, %1, %cst {dimension_numbers = #tpu.dot_dimension_numbers<[1], [0], [0], [1], [0, 0, 1, 1], [], []>} : vector<16x36xbf16>, vector<36x4xbf16>, vector<16x4xf32> -> vector<16x4xf32>
    %c0_12 = arith.constant 0 : index
    %c0_13 = arith.constant 0 : index
    %c0_14 = arith.constant 0 : index
    %c0_15 = arith.constant 0 : index
    %10 = vector.load %arg6[%c0_12, %c0_13, %c0_14, %c0_15] : memref<1x1x16x36xbf16, #tpu.memory_space<vmem>>, vector<1x1x16x36xbf16>
    %11 = vector.shape_cast %10 : vector<1x1x16x36xbf16> to vector<16x36xbf16>
    %cst_16 = arith.constant dense<0.000000e+00> : vector<16x4xf32>
    %12 = tpu.matmul %11, %3, %cst_16 {dimension_numbers = #tpu.dot_dimension_numbers<[1], [0], [0], [1], [0, 0, 1, 1], [], []>} : vector<16x36xbf16>, vector<36x4xbf16>, vector<16x4xf32> -> vector<16x4xf32>
    %13 = arith.addf %9, %12 : vector<16x4xf32>
    %c0_17 = arith.constant 0 : index
    %c0_18 = arith.constant 0 : index
    %c0_19 = arith.constant 0 : index
    %c0_20 = arith.constant 0 : index
    %14 = vector.load %arg7[%c0_17, %c0_18, %c0_19, %c0_20] : memref<1x1x16x36xbf16, #tpu.memory_space<vmem>>, vector<1x1x16x36xbf16>
    %15 = vector.shape_cast %14 : vector<1x1x16x36xbf16> to vector<16x36xbf16>
    %cst_21 = arith.constant dense<0.000000e+00> : vector<16x4xf32>
    %16 = tpu.matmul %15, %5, %cst_21 {dimension_numbers = #tpu.dot_dimension_numbers<[1], [0], [0], [1], [0, 0, 1, 1], [], []>} : vector<16x36xbf16>, vector<36x4xbf16>, vector<16x4xf32> -> vector<16x4xf32>
    %17 = arith.addf %13, %16 : vector<16x4xf32>
    %18 = vector.broadcast %6 : vector<1x4xf32> to vector<16x4xf32>
    %19 = arith.addf %17, %18 : vector<16x4xf32>
    %c0_22 = arith.constant 0 : index
    %c0_23 = arith.constant 0 : index
    %c0_24 = arith.constant 0 : index
    %c0_25 = arith.constant 0 : index
    %20 = vector.load %arg10[%c0_22, %c0_23, %c0_24, %c0_25] : memref<1x2x16x4xf32, #tpu.memory_space<vmem>>, vector<1x1x16x4xf32>
    %21 = vector.shape_cast %20 : vector<1x1x16x4xf32> to vector<16x4xf32>
    %22 = vector.shape_cast %19 : vector<16x4xf32> to vector<1x1x16x4xf32>
    tpu.vector_store %arg10[%c0_22, %c0_23, %c0_24, %c0_25], %22 {strides = array<i32>} : memref<1x2x16x4xf32, #tpu.memory_space<vmem>>, vector<1x1x16x4xf32>,
    %c0_26 = arith.constant 0 : index
    %c0_27 = arith.constant 0 : index
    %c0_28 = arith.constant 0 : index
    %c0_29 = arith.constant 0 : index
    %23 = vector.load %arg7[%c0_26, %c0_27, %c0_28, %c0_29] : memref<1x1x16x36xbf16, #tpu.memory_space<vmem>>, vector<1x1x16x36xbf16>
    %24 = vector.shape_cast %23 : vector<1x1x16x36xbf16> to vector<16x36xbf16>
    %cst_30 = arith.constant dense<0.000000e+00> : vector<16x4xf32>
    %25 = tpu.matmul %24, %1, %cst_30 {dimension_numbers = #tpu.dot_dimension_numbers<[1], [0], [0], [1], [0, 0, 1, 1], [], []>} : vector<16x36xbf16>, vector<36x4xbf16>, vector<16x4xf32> -> vector<16x4xf32>
    %c0_31 = arith.constant 0 : index
    %c0_32 = arith.constant 0 : index
    %c0_33 = arith.constant 0 : index
    %c0_34 = arith.constant 0 : index
    %26 = vector.load %arg8[%c0_31, %c0_32, %c0_33, %c0_34] : memref<1x1x16x36xbf16, #tpu.memory_space<vmem>>, vector<1x1x16x36xbf16>
    %27 = vector.shape_cast %26 : vector<1x1x16x36xbf16> to vector<16x36xbf16>
    %cst_35 = arith.constant dense<0.000000e+00> : vector<16x4xf32>
    %28 = tpu.matmul %27, %3, %cst_35 {dimension_numbers = #tpu.dot_dimension_numbers<[1], [0], [0], [1], [0, 0, 1, 1], [], []>} : vector<16x36xbf16>, vector<36x4xbf16>, vector<16x4xf32> -> vector<16x4xf32>
    %29 = arith.addf %25, %28 : vector<16x4xf32>
    %c0_36 = arith.constant 0 : index
    %c0_37 = arith.constant 0 : index
    %c0_38 = arith.constant 0 : index
    %c0_39 = arith.constant 0 : index
    %30 = vector.load %arg9[%c0_36, %c0_37, %c0_38, %c0_39] : memref<1x1x16x36xbf16, #tpu.memory_space<vmem>>, vector<1x1x16x36xbf16>
    %31 = vector.shape_cast %30 : vector<1x1x16x36xbf16> to vector<16x36xbf16>
    %cst_40 = arith.constant dense<0.000000e+00> : vector<16x4xf32>
    %32 = tpu.matmul %31, %5, %cst_40 {dimension_numbers = #tpu.dot_dimension_numbers<[1], [0], [0], [1], [0, 0, 1, 1], [], []>} : vector<16x36xbf16>, vector<36x4xbf16>, vector<16x4xf32> -> vector<16x4xf32>
    %33 = arith.addf %29, %32 : vector<16x4xf32>
    %34 = vector.broadcast %6 : vector<1x4xf32> to vector<16x4xf32>
    %35 = arith.addf %33, %34 : vector<16x4xf32>
    %c0_41 = arith.constant 0 : index
    %c1_42 = arith.constant 1 : index
    %c0_43 = arith.constant 0 : index
    %c0_44 = arith.constant 0 : index
    %36 = vector.load %arg10[%c0_41, %c1_42, %c0_43, %c0_44] : memref<1x2x16x4xf32, #tpu.memory_space<vmem>>, vector<1x1x16x4xf32>
    %37 = vector.shape_cast %36 : vector<1x1x16x4xf32> to vector<16x4xf32>
    %38 = vector.shape_cast %35 : vector<16x4xf32> to vector<1x1x16x4xf32>
    tpu.vector_store %arg10[%c0_41, %c1_42, %c0_43, %c0_44], %38 {strides = array<i32>} : memref<1x2x16x4xf32, #tpu.memory_space<vmem>>, vector<1x1x16x4xf32>,
    return
  }
  func.func @transform_0(%arg0: i32, %arg1: i32, %arg2: i32) -> (i32, i32, i32) {
    %c0_i32 = arith.constant 0 : i32
    %c0_i32_0 = arith.constant 0 : i32
    %c0_i32_1 = arith.constant 0 : i32
    %c0_i32_2 = arith.constant 0 : i32
    return %c0_i32, %c0_i32_0, %c0_i32_1 : i32, i32, i32
  }
  func.func @transform_1(%arg0: i32, %arg1: i32, %arg2: i32) -> (i32, i32) {
    %c0_i32 = arith.constant 0 : i32
    %c0_i32_0 = arith.constant 0 : i32
    %c0_i32_1 = arith.constant 0 : i32
    return %c0_i32, %c0_i32_0 : i32, i32
  }
  func.func @transform_2(%arg0: i32, %arg1: i32, %arg2: i32) -> (i32, i32, i32, i32) {
    %c4_i32 = arith.constant 4 : i32
    %0 = arith.muli %c4_i32, %arg1 : i32
    %c0_i32 = arith.constant 0 : i32
    %1 = arith.addi %0, %c0_i32 : i32
    %c0_i32_0 = arith.constant 0 : i32
    %c0_i32_1 = arith.constant 0 : i32
    return %arg0, %1, %arg2, %c0_i32_0 : i32, i32, i32, i32
  }
  func.func @transform_3(%arg0: i32, %arg1: i32, %arg2: i32) -> (i32, i32, i32, i32) {
    %c4_i32 = arith.constant 4 : i32
    %0 = arith.muli %c4_i32, %arg1 : i32
    %c1_i32 = arith.constant 1 : i32
    %1 = arith.addi %0, %c1_i32 : i32
    %c0_i32 = arith.constant 0 : i32
    %c0_i32_0 = arith.constant 0 : i32
    return %arg0, %1, %arg2, %c0_i32 : i32, i32, i32, i32
  }
  func.func @transform_4(%arg0: i32, %arg1: i32, %arg2: i32) -> (i32, i32, i32, i32) {
    %c4_i32 = arith.constant 4 : i32
    %0 = arith.muli %c4_i32, %arg1 : i32
    %c2_i32 = arith.constant 2 : i32
    %1 = arith.addi %0, %c2_i32 : i32
    %c0_i32 = arith.constant 0 : i32
    %c0_i32_0 = arith.constant 0 : i32
    return %arg0, %1, %arg2, %c0_i32 : i32, i32, i32, i32
  }
  func.func @transform_5(%arg0: i32, %arg1: i32, %arg2: i32) -> (i32, i32, i32, i32) {
    %c4_i32 = arith.constant 4 : i32
    %0 = arith.muli %c4_i32, %arg1 : i32
    %c3_i32 = arith.constant 3 : i32
    %1 = arith.addi %0, %c3_i32 : i32
    %c0_i32 = arith.constant 0 : i32
    %c0_i32_0 = arith.constant 0 : i32
    return %arg0, %1, %arg2, %c0_i32 : i32, i32, i32, i32
  }
  func.func @transform_6(%arg0: i32, %arg1: i32, %arg2: i32) -> (i32, i32, i32, i32) {
    %c4_i32 = arith.constant 4 : i32
    %0 = arith.muli %c4_i32, %arg1 : i32
    %c4_i32_0 = arith.constant 4 : i32
    %1 = arith.addi %0, %c4_i32_0 : i32
    %c0_i32 = arith.constant 0 : i32
    %c0_i32_1 = arith.constant 0 : i32
    return %arg0, %1, %arg2, %c0_i32 : i32, i32, i32, i32
  }
  func.func @transform_7(%arg0: i32, %arg1: i32, %arg2: i32) -> (i32, i32, i32, i32) {
    %c0_i32 = arith.constant 0 : i32
    %c0_i32_0 = arith.constant 0 : i32
    return %arg0, %arg1, %arg2, %c0_i32 : i32, i32, i32, i32
  }
}

</mosaic_0001>

<bundles_post_ra>
// kernel: downsample_pallas.1
= control target key start
LH: loop header
LB: loop body
LE: loop exit
PB: predicated region body
PF: predicated region fallthrough
CT: control target
= control target key end

     0   :  { %s1524_s24 = smov 0   ;;  %s1526_s25 = smov 0   ;;  %s1713_s0 = inlined_call_operand.vmem [shape: bf16[3,36,4], index: 0, kind: input, shape index: {}]   ;;  %s1714_s1 = inlined_call_operand.vmem [shape: f32[1,4], index: 1, kind: input, shape index: {}]   ;;  %s1715_s2 = inlined_call_operand.vmem [shape: bf16[2,10,16,36], index: 2, kind: input, shape index: {}, may-alias: {2,3,4,5,6}]   ;;  %s1716_s3 = inlined_call_operand.vmem [shape: bf16[2,10,16,36], index: 3, kind: input, shape index: {}, may-alias: {2,3,4,5,6}]   ;;  %s1717_s4 = inlined_call_operand.vmem [shape: bf16[2,10,16,36], index: 4, kind: input, shape index: {}, may-alias: {2,3,4,5,6}]   ;;  %s1718_s5 = inlined_call_operand.vmem [shape: bf16[2,10,16,36], index: 5, kind: input, shape index: {}, may-alias: {2,3,4,5,6}]   ;;  %s1719_s6 = inlined_call_operand.vmem [shape: bf16[2,10,16,36], index: 6, kind: input, shape index: {}, may-alias: {2,3,4,5,6}]   ;;  %s1720_s7 = inlined_call_operand.vmem [shape: f32[2,4,16,4], index: 7, kind: output, shape index: {}]  }
   0x1   :  { %s1528_s26 = smov 0   ;;  %s1530_s27 = smov 0  }
   0x2   :  { %s1532_s28 = smov 0  }
   0x3 LB: > { %s32_s29 = sadd.s32 1, %s1472_s26  ;;  %s36_s30 = sadd.s32 1, %s1476_s27  ;;  %s1480_s28 = sphi %s1532_s28, %s17_s28   ;;  %s1476_s27 = sphi %s1530_s27, %s1729_s27   ;;  %s1472_s26 = sphi %s1528_s26, %s1728_s26   ;;  %s1468_s25 = sphi %s1526_s25, %s1727_s25   ;;  %s1464_s24 = sphi %s1524_s24, %s1726_s24  }
   0x4   : > { %p34_p0 = scmp.ge.s32.totalorder %s32_s29, 2  ;;  %p1244_p1 = scmp.ge.s32.totalorder %s1480_s28, 1 }
   0x5   : > { %p401_p2 = scmp.lt.s32.totalorder %s1480_s28, 5 }
   0x6   : > { %s1731_s29 = smov (%p34_p0, %s32_s29), 0  ;;  %s1733_s30 = smov (!%p34_p0, %s36_s30), %s1476_s27 }
   0x7   : > { %1721 = sst [smem:[#allocation2_spill]] %s1731_s29  ;;  %p402_p3 = pnand %p1244_p1, %p401_p2 }
   0x8   : > { %p38_p4 = scmp.ge.s32.totalorder %s1733_s30, 2  ;;  %v1427_v0 = vld [vmem:[%s1713_s0 + $0x14] sm:$0xff] (!%p402_p3)   ;;  %v1482_v1 = vmov (!%p402_p3), 0.0   ;;  %v1566_v2 = vld [vmem:[%s1713_s0] sm:$0xff] (!%p402_p3)   ;;  %vm662_vm0 = vcmask (!%p402_p3), 1041408   ;;  %v1578_v4 = vld [vmem:[%s1713_s0 + $0x8] sm:$0xff] (!%p402_p3)  }
   0x9   : > { %405 = sbr.rel (%p402_p3) target bundleno = 268 (0x10c), region = 48  ;;  %1324 = vmatprep.subr.bf16.mxu0 (!%p402_p3), %v1482_v1  ;;  %1334 = vmatprep.subr.bf16.mxu1 (!%p402_p3), %v1482_v1  ;;  %v1571_v3 = vld [vmem:[%s1713_s0 + $0x1c] sm:$0xff] (!%p402_p3)   ;;  %s1581_s16 = sshll.u32 (!%p402_p3), %s1464_s24, 2  ;;  %v1431_v5 = vld [vmem:[%s1713_s0 + $0x24] ss:$0 sps:$4 sm:$0x33] (!%p402_p3)  }
   0xa   : > { %s1735_s30 = smov (%p38_p4, %s1733_s30), 0  ;;  %1325 = vmatpush3.bf16.msra.mxu0 (!%p402_p3), %v1427_v0  ;;  %1335 = vmatpush3.bf16.msra.mxu1 (!%p402_p3), %v1566_v2  ;;  %vm1483_vm1 = vmmov (!%p402_p3), 0   ;;  %p513_p5 = scmp.lt.s32.totalorder (!%p402_p3), %s1468_s25, 1  ;;  %v1432_v6 = vld [vmem:[%s1713_s0 + $0x10] ss:$0 sps:$4 sm:$0x33] (!%p402_p3)  }
   0xb   : > { %1722 = sst [smem:[#allocation3_spill]] %s1735_s30  ;;  %1326 = vmatprep.subr.bf16.mxu0 (!%p402_p3), %v1482_v1  ;;  %1336 = vmatprep.subr.bf16.mxu1 (!%p402_p3), %v1482_v1  ;;  %s528_s21 = sadd.s32 (!%p402_p3), 1, %s1581_s16  ;;  %v664_v7 = vsel (!%p402_p3), %vm662_vm0, %v1431_v5, 0  ;;  %v1604_v8 = vsel (!%p402_p3), %vm662_vm0, %v1432_v6, 0  ;;  %vm658_vm2 = vcmask (!%p402_p3), 293888   ;;  %v1435_v9 = vld [vmem:[%s1713_s0 + $0x28] sm:$0xff] (!%p402_p3)  }
   0xc   : > { %1330 = vmatprep.mubr.msk.bf16.mxu0 (!%p402_p3), %vm1483_vm1, %v1482_v1  ;;  %1340 = vmatprep.mubr.msk.bf16.mxu1 (!%p402_p3), %vm1483_vm1, %v1482_v1  ;;  %p532_p6 = scmp.lt.s32.totalorder (!%p402_p3), %s528_s21, 9  ;;  %p515_p7 = scmp.lt.s32.totalorder (!%p402_p3), %s1581_s16, 9  ;;  %v1436_v12 = vld [vmem:[%s1713_s0 + $0x30] sm:$0xff] (!%p402_p3)   ;;  %v1437_v13 = vld [vmem:[%s1713_s0 + $0x38] ss:$0 sps:$4 sm:$0x33] (!%p402_p3)  }
   0xd   : > { %s546_s23 = sadd.s32 (!%p402_p3), 2, %s1581_s16  ;;  %v800_v14 = vsel (!%p402_p3), %vm662_vm0, %v1437_v13, 0  ;;  %v1289_v29 = vld [vmem:[%s1714_s1] ss:$0 sm:$0xff] (!%p402_p3)  ;;  %vm853_vm3 = vcmask (!%p402_p3), 31744  }
   0xe   : > { %1327 = vmatpush3.bf16.msra.mxu0 (!%p402_p3), %v1571_v3  ;;  %1337 = vmatpush3.bf16.msra.mxu1 (!%p402_p3), %v1578_v4  ;;  %p1615_p8 = scmp.lt.s32.totalorder (!%p402_p3), %s546_s23, 9 }
   0xf   : > { %1328 = vmatprep.subr.bf16.mxu0 (!%p402_p3), %v1482_v1  ;;  %1338 = vmatprep.subr.bf16.mxu1 (!%p402_p3), %v1482_v1 }
  0x10   : > { %s1737_s25 = smov (!%p513_p5, %s1468_s25), 1  ;;  %s1739_s21 = smov (!%p532_p6, %s528_s21), 9 }
  0x11   : > { %s1609_s22 = smul.u32 20, %s1737_s25  ;;  %s1249_s9 = sshll.u32 %s1739_s21, 1 }
  0x12   : > { %1329 = vmatpush3.bf16.msra.mxu0 %v664_v7  ;;  %s516_s8 = scalar_select %p515_p7, %s1581_s16, 9  ;;  %1339 = vmatpush3.bf16.msra.mxu1 %v1604_v8 }
  0x13   : > { %1344 = vmatprep.subr.bf16.mxu0 %v1482_v1  ;;  %s539_s11 = sadd.s32 %s1609_s22, %s1249_s9  ;;  %1354 = vmatprep.subr.bf16.mxu1 %v1482_v1  ;;  %s564_s9 = sadd.s32 3, %s1581_s16 }
  0x14   : > { %s1246_s12 = sshll.u32 %s516_s8, 1  ;;  %s1250_s13 = sshll.u32 %s539_s11, 2 }
  0x15   : > { %s522_s14 = sadd.s32 %s1609_s22, %s1246_s12  ;;  %s541_s18 = scalar_lea.vmem %s1716_s3, %s1250_s13 }
  0x16   : > { %s1247_s19 = sshll.u32 %s522_s14, 2  ;;  %v1433_v10 = vld [vmem:[%s541_s18] sm:$0xff]   ;;  %s1741_s23 = smov (!%p1615_p8, %s546_s23), 9 }
  0x17   : > { %s524_s8 = scalar_lea.vmem %s1715_s2, %s1247_s19  ;;  %1331 = vmatmul.mubr.msk.bf16.vlgmr.msra.gmra.mrb[0].mxu0 %vm658_vm2, %v1433_v10  ;;  %s582_s11 = sadd.s32 4, %s1581_s16 }
  0x18   : > { %v1434_v11 = vld [vmem:[%s524_s8] sm:$0xff]   ;;  %1345 = vmatpush3.bf16.msra.mxu0 %v1435_v9  ;;  %s1252_s14 = sshll.u32 %s1741_s23, 1  ;;  %p568_p9 = scmp.lt.s32.totalorder %s564_s9, 9  ;;  %1350 = vmatprep.mubr.msk.bf16.mxu0 %vm1483_vm1, %v1482_v1 }
  0x19   : > { %1341 = vmatmul.mubr.msk.bf16.vlgmr.msra.gmra.mrb[0].mxu1 %vm658_vm2, %v1434_v11  ;;  %1346 = vmatprep.subr.bf16.mxu0 %v1482_v1  ;;  %s557_s10 = sadd.s32 %s1609_s22, %s1252_s14  ;;  %p586_p10 = scmp.lt.s32.totalorder %s582_s11, 9 }
  0x1a   : > { %1355 = vmatpush3.bf16.msra.mxu1 %v1427_v0  ;;  %s1253_s16 = sshll.u32 %s557_s10, 2  ;;  %1360 = vmatprep.mubr.msk.bf16.mxu1 %vm1483_vm1, %v1482_v1  ;;  %s1743_s9 = smov (!%p568_p9, %s564_s9), 9 }
  0x1b   : > { %1356 = vmatprep.subr.bf16.mxu1 %v1482_v1  ;;  %s1653_s17 = scalar_lea.vmem %s1717_s4, %s1253_s16  ;;  %s1745_s11 = smov (!%p586_p10, %s582_s11), 9 }
  0x1c   : > { %1347 = vmatpush3.bf16.msra.mxu0 %v1436_v12  ;;  %s1255_s18 = sshll.u32 %s1743_s9, 1  ;;  %v1438_v15 = vld [vmem:[%s1653_s17] sm:$0xff]   ;;  %s1258_s20 = sshll.u32 %s1745_s11, 1 }
  0x1d   : > { %1348 = vmatprep.subr.bf16.mxu0 %v1482_v1  ;;  %s575_s19 = sadd.s32 %s1609_s22, %s1255_s18  ;;  %s593_s8 = sadd.s32 %s1609_s22, %s1258_s20  ;;  %v1440_v17 = vld [vmem:[%s1653_s17] sm:$0xff]  }
  0x1e   : > { %1357 = vmatpush3.bf16.msra.mxu1 %v1571_v3  ;;  %s1256_s21 = sshll.u32 %s575_s19, 2  ;;  %s1259_s29 = sshll.u32 %s593_s8, 2 }
  0x1f   : > { %1358 = vmatprep.subr.bf16.mxu1 %v1482_v1  ;;  %s577_s14 = scalar_lea.vmem %s1718_s5, %s1256_s21  ;;  %s595_s10 = scalar_lea.vmem %s1719_s6, %s1259_s29 }
  0x20   : > { %1349 = vmatpush3.bf16.msra.mxu0 %v800_v14  ;;  %v1439_v16 = vld [vmem:[%s577_s14] sm:$0xff]   ;;  %s1260_s22 = sshll.u32 %s1464_s24, 1  ;;  %s1262_s16 = sshll.u32 %s1737_s25, 3 }
  0x21   : > { %1364 = vmatprep.subr.bf16.mxu0 %v1482_v1  ;;  %v1441_v18 = vld [vmem:[%s595_s10] sm:$0xff]   ;;  %p603_p11 = scmp.lt.s32.totalorder %s1260_s22, 3 }
  0x22   : > { %1359 = vmatpush3.bf16.msra.mxu1 %v664_v7 }
  0x23   : > { %1374 = vmatprep.subr.bf16.mxu1 %v1482_v1  ;;  %1351 = vmatmul.mubr.msk.bf16.vlgmr.msra.gmra.mrb[4].mxu0 %vm658_vm2, %v1438_v15  ;;  %s1747_s22 = smov (!%p603_p11, %s1260_s22), 3 }
  0x24   : > { %1365 = vmatpush3.bf16.msra.mxu0 %v1566_v2  ;;  %1370 = vmatprep.mubr.msk.bf16.mxu0 %vm1483_vm1, %v1482_v1  ;;  %s1261_s11 = sshll.u32 %s1747_s22, 1 }
  0x25   : > { %1361 = vmatmul.mubr.msk.bf16.vlgmr.msra.gmra.mrb[4].mxu1 %vm658_vm2, %v1439_v16  ;;  %1366 = vmatprep.subr.bf16.mxu0 %v1482_v1  ;;  %s610_s23 = sadd.s32 %s1262_s16, %s1261_s11 }
  0x26   : > { %1375 = vmatpush3.bf16.msra.mxu1 %v1435_v9  ;;  %1380 = vmatprep.mubr.msk.bf16.mxu1 %vm1483_vm1, %v1482_v1  ;;  %s1263_s15 = sshll.u32 %s610_s23, 3 }
  0x27   : > { %1376 = vmatprep.subr.bf16.mxu1 %v1482_v1  ;;  %s612_s20 = scalar_lea.vmem %s1720_s7, %s1263_s15 }
  0x28   : > { %1367 = vmatpush3.bf16.msra.mxu0 %v1578_v4 }
  0x29   : > { %1368 = vmatprep.subr.bf16.mxu0 %v1482_v1 }
  0x2a   : > { %1377 = vmatpush3.bf16.msra.mxu1 %v1436_v12 }
  0x2b   : > { %1378 = vmatprep.subr.bf16.mxu1 %v1482_v1 }
  0x2c   : > { %1369 = vmatpush3.bf16.msra.mxu0 %v1604_v8 }
  0x2e   : > { %1379 = vmatpush3.bf16.msra.mxu1 %v800_v14 }
  0x2f   : > { %1371 = vmatmul.mubr.msk.bf16.vlgmr.msra.gmra.mrb[8].mxu0 %vm658_vm2, %v1440_v17 }
  0x31   : > { %1381 = vmatmul.mubr.msk.bf16.vlgmr.msra.gmra.mrb[8].mxu1 %vm658_vm2, %v1441_v18 }
  0xea   : > { %v700_v19 = vpop.f32.mrb[0].mxu0 }
  0xeb   : > { %v1332_v21 = vpop.f32.mrb[1].mxu0 }
  0xec   : > { %v767_v20 = vpop.f32.mrb[0].mxu1  ;;  %v703_v24 = vpop.f32.mrb[2].mxu0 }
  0xed   : > { %v768_v22 = vadd.f32 %v767_v20, %v700_v19  ;;  %v1342_v23 = vpop.f32.mrb[1].mxu1  ;;  %v1333_v26 = vpop.f32.mrb[3].mxu0 }
  0xee   : > { %v770_v25 = vpop.f32.mrb[2].mxu1 }
  0xef   : > { %v771_v27 = vadd.f32 %v770_v25, %v703_v24  ;;  %v1343_v28 = vpop.f32.mrb[3].mxu1 }
  0xf6   : > { %v836_v30 = vpop.f32.mrb[4].mxu0 }
  0xf7   : > { %v843_v31 = vadd.f32 %v836_v30, %v768_v22  ;;  %v1352_v33 = vpop.f32.mrb[5].mxu0 }
  0xf8   : > { %v902_v32 = vpop.f32.mrb[4].mxu1  ;;  %v839_v35 = vpop.f32.mrb[6].mxu0 }
  0xf9   : > { %v1362_v34 = vpop.f32.mrb[5].mxu1  ;;  %v851_v36 = vadd.f32 %v1289_v29, %v843_v31  ;;  %v844_v37 = vadd.f32 %v839_v35, %v771_v27  ;;  %v1353_v39 = vpop.f32.mrb[7].mxu0 }
  0xfa   : > { %v905_v38 = vpop.f32.mrb[6].mxu1 }
  0xfb   : > { %v1363_v40 = vpop.f32.mrb[7].mxu1  ;;  %854 = vst.msk [vmem:[%s612_s20] sm:$0xff] %vm853_vm3, %v851_v36  ;;  %v852_v41 = vadd.f32 %v1289_v29, %v844_v37 }
  0xfd   : > { %855 = vst.msk [vmem:[%s612_s20 + $0x8] sm:$0xff] %vm853_vm3, %v852_v41 }
 0x102   : > { %v951_v42 = vpop.f32.mrb[8].mxu0 }
 0x103   : > { %v952_v43 = vadd.f32 %v951_v42, %v902_v32  ;;  %v1372_v45 = vpop.f32.mrb[9].mxu0 }
 0x104   : > { %v1002_v44 = vpop.f32.mrb[8].mxu1  ;;  %v954_v47 = vpop.f32.mrb[10].mxu0 }
 0x105   : > { %v1382_v46 = vpop.f32.mrb[9].mxu1  ;;  %v1009_v48 = vadd.f32 %v1002_v44, %v952_v43  ;;  %v955_v49 = vadd.f32 %v954_v47, %v905_v38  ;;  %v1373_v51 = vpop.f32.mrb[11].mxu0 }
 0x106   : > { %v1005_v50 = vpop.f32.mrb[10].mxu1 }
 0x107   : > { %v1383_v52 = vpop.f32.mrb[11].mxu1  ;;  %v1011_v53 = vadd.f32 %v1289_v29, %v1009_v48  ;;  %v1010_v54 = vadd.f32 %v1005_v50, %v955_v49 }
 0x109   : > { %1296 = vst.msk [vmem:[%s612_s20 + $0x10] sm:$0xff] %vm853_vm3, %v1011_v53  ;;  %v1012_v55 = vadd.f32 %v1289_v29, %v1010_v54 }
 0x10b   : > { %1297 = vst.msk [vmem:[%s612_s20 + $0x18] sm:$0xff] %vm853_vm3, %v1012_v55 }
 0x10c PF: > { %s17_s28 = sadd.s32 1, %s1480_s28   ;;  %s1724_s21 = sld [smem:[#allocation2_spill]] }
 0x10d   : > { %p14_p12 = scmp.ge.s32.totalorder %s17_s28, 6   ;;  %s1725_s8 = sld [smem:[#allocation3_spill]] }
 0x10e   : > { %s1726_s24 = smov %s1472_s26  ;;  %s1727_s25 = smov %s1476_s27 }
 0x10f   :  { %16 = sbr.rel (!%p14_p12) target bundleno = 3 (0x3), region = 93 }
 0x112   : > { %s1728_s26 = smov %s1724_s21 }
 0x113   : > { %s1729_s27 = smov %s1725_s8 }

</bundles_post_ra>
